<compile_context>
chip_gen: v7x
topology: tpu7x:2x2x1
jax: 0.10.0
libtpu: 0.0.40
codegen_flags: <defaults>
</compile_context>

<pallas_src>
import functools

import jax
import jax.numpy as jnp
from jax import lax
from jax.experimental import pallas as pl
from jax.experimental.pallas import tpu as pltpu


def _pick_tile(n, candidates=(256, 128, 64, 32, 16, 8)):
    """Largest candidate tile that evenly divides n (falls back to n itself)."""
    for c in candidates:
        if n % c == 0:
            return c
    # TODO(synk): shapes whose row count is not a multiple of 8 fall back to a
    # single full block; production shapes should pad rows to a multiple of 8.
    return n


# ---------------------------------------------------------------------------
# Pass 1: L2-normalize z1 / z2 (f32 math, rsqrt), emit bf16 features for the
#         MXU plus per-row positive-pair dots  sum_d z1n[i,d] * z2n[i,d].
# ---------------------------------------------------------------------------
def _normalize_kernel(z1_ref, z2_ref, f1_ref, f2_ref, pos_ref):
    z1 = z1_ref[...].astype(jnp.float32)          # (Tb, D)
    z2 = z2_ref[...].astype(jnp.float32)          # (Tb, D)

    # F.normalize(x, dim=1): x / max(||x||, 1e-12) == x * rsqrt(max(||x||^2, 1e-24))
    inv1 = lax.rsqrt(jnp.maximum(jnp.sum(z1 * z1, axis=1, keepdims=True), 1e-24))
    inv2 = lax.rsqrt(jnp.maximum(jnp.sum(z2 * z2, axis=1, keepdims=True), 1e-24))
    z1n = z1 * inv1
    z2n = z2 * inv2

    f1_ref[...] = z1n.astype(jnp.bfloat16)
    f2_ref[...] = z2n.astype(jnp.bfloat16)
    pos_ref[...] = jnp.sum(z1n * z2n, axis=1, keepdims=True)      # (Tb, 1) f32


# ---------------------------------------------------------------------------
# Pass 2: tiled online (max-subtracted) logsumexp of sim = feats @ feats.T / T
#         over the 2B x 2B similarity matrix, one row tile per "parallel" grid
#         index, streaming column tiles along the "arbitrary" axis.
# ---------------------------------------------------------------------------
def _lse_kernel(rows_ref, cols_ref, lse_ref, m_ref, l_ref, *, inv_temp):
    j = pl.program_id(1)

    @pl.when(j == 0)
    def _init():
        m_ref[...] = jnp.full(m_ref.shape, -jnp.inf, jnp.float32)
        l_ref[...] = jnp.zeros(l_ref.shape, jnp.float32)

    # Fold 1/temperature into the LHS tile only (rows/cols are distinct refs,
    # so the scale is applied exactly once per similarity entry).
    rows = (rows_ref[...].astype(jnp.float32) * inv_temp).astype(jnp.bfloat16)
    cols = cols_ref[...]                                          # (Tc, D) bf16

    # Similarity tile on the MXU: contract last dims of both operands (no
    # explicit transpose), bf16 inputs, f32 accumulation.
    s = lax.dot_general(rows, cols, (((1,), (1,)), ((), ())),
                        preferred_element_type=jnp.float32)       # (Tr, Tc)

    # Online stable logsumexp update (exp/log/max all in f32 on the VPU/EUP).
    m_prev = m_ref[...]                                           # (Tr, 1)
    m_new = jnp.maximum(m_prev, jnp.max(s, axis=1, keepdims=True))
    l_ref[...] = (l_ref[...] * jnp.exp(m_prev - m_new)
                  + jnp.sum(jnp.exp(s - m_new), axis=1, keepdims=True))
    m_ref[...] = m_new

    @pl.when(j == pl.num_programs(1) - 1)
    def _finalize():
        lse_ref[...] = m_ref[...] + jnp.log(l_ref[...])


def contrastive_loss(z1, z2, labels=None, temperature=0.07):
    """Pallas implementation of ContrastiveLoss.forward (labels are unused)."""
    del labels  # unused by the PyTorch module's forward; kept for API parity
    assert z1.shape == z2.shape and z1.ndim == 2
    b, d = z1.shape
    n = 2 * b
    inv_temp = 1.0 / float(temperature)

    # ---- pass 1: normalize + positive-pair dots ---------------------------
    tb = _pick_tile(b)
    f1, f2, pos = pl.pallas_call(
        _normalize_kernel,
        out_shape=(
            jax.ShapeDtypeStruct((b, d), jnp.bfloat16),
            jax.ShapeDtypeStruct((b, d), jnp.bfloat16),
            jax.ShapeDtypeStruct((b, 1), jnp.float32),
        ),
        grid=(b // tb,),
        in_specs=[
            pl.BlockSpec((tb, d), lambda i: (i, 0)),
            pl.BlockSpec((tb, d), lambda i: (i, 0)),
        ],
        out_specs=(
            pl.BlockSpec((tb, d), lambda i: (i, 0)),
            pl.BlockSpec((tb, d), lambda i: (i, 0)),
            pl.BlockSpec((tb, 1), lambda i: (i, 0)),
        ),
        compiler_params=pltpu.CompilerParams(dimension_semantics=("parallel",)),
    )(z1, z2)

    # features = cat([z1n, z2n], 0): HBM-level copy by XLA (O(2B*D) bytes,
    # negligible next to the O(B^2*D) similarity pass); never copied in VMEM.
    feats = jnp.concatenate([f1, f2], axis=0)                     # (2B, D) bf16

    # ---- pass 2: tiled online logsumexp over the (2B, 2B) similarities ----
    tr = _pick_tile(n)
    tc = _pick_tile(n)
    lse = pl.pallas_call(
        functools.partial(_lse_kernel, inv_temp=inv_temp),
        out_shape=jax.ShapeDtypeStruct((n, 1), jnp.float32),
        grid_spec=pltpu.PrefetchScalarGridSpec(
            num_scalar_prefetch=0,
            grid=(n // tr, n // tc),
            in_specs=[
                pl.BlockSpec((tr, d), lambda i, j: (i, 0)),       # row tile
                pl.BlockSpec((tc, d), lambda i, j: (j, 0)),       # col tile
            ],
            out_specs=pl.BlockSpec((tr, 1), lambda i, j: (i, 0)),
            scratch_shapes=[
                pltpu.VMEM((tr, 1), jnp.float32),                 # running max
                pltpu.VMEM((tr, 1), jnp.float32),                 # running sum
            ],
        ),
        compiler_params=pltpu.CompilerParams(
            dimension_semantics=("parallel", "arbitrary")),
    )(feats, feats)
    # TODO(synk): for very large feature dims (D >~ 8K) the K dimension should
    # also be tiled (third grid axis) to stay within the default scoped VMEM.

    # loss = -(sum over positive pairs of log_prob) / 2B
    #      = (sum_i logsumexp_i - 2 * sum_i z1n[i]·z2n[i] / temperature) / 2B
    pos_total = 2.0 * jnp.sum(pos) * inv_temp
    return (jnp.sum(lse) - pos_total) / jnp.float32(n)


def _reference_loss(z1, z2, temperature=0.07):
    # Pure-JAX f32 reference mirroring the PyTorch module.
    z1 = z1 / jnp.maximum(jnp.linalg.norm(z1, axis=1, keepdims=True), 1e-12)
    z2 = z2 / jnp.maximum(jnp.linalg.norm(z2, axis=1, keepdims=True), 1e-12)
    feats = jnp.concatenate([z1, z2], axis=0)
    sim = feats @ feats.T / temperature
    log_prob = sim - jnp.log(jnp.sum(jnp.exp(sim), axis=1, keepdims=True))
    n2b = sim.shape[0]
    b = n2b // 2
    idx = jnp.arange(n2b)
    pos_mask = (jnp.abs(idx[:, None] - idx[None, :]) == b).astype(jnp.float32)
    return -jnp.sum(pos_mask * log_prob) / n2b


if __name__ == "__main__":
    B, D = 8, 32  # small shapes: batch = 8, feature (hidden) dim = 32
    key = jax.random.PRNGKey(0)
    k1, k2 = jax.random.split(key)
    z1 = jax.random.normal(k1, (B, D), dtype=jnp.float32)
    z2 = jax.random.normal(k2, (B, D), dtype=jnp.float32)
    labels = jnp.arange(B, dtype=jnp.int32)  # unused by the loss (API parity)

    loss = jax.block_until_ready(contrastive_loss(z1, z2, labels, temperature=0.07))
    ref = _reference_loss(z1, z2, temperature=0.07)

    assert jnp.isfinite(loss), "loss is not finite"
    # bf16 MXU operands (f32 accumulation) vs an all-f32 reference: allow
    # percent-level slack; observed differences are well inside this bound.
    assert jnp.allclose(loss, ref, atol=5e-2, rtol=5e-2), (loss, ref)
    print("KERNEL_OK")
</pallas_src>

<mosaic_0001>
module attributes {stable_mosaic.version = 11 : i64} {
  func.func @_normalize_kernel(%arg0: i32, %arg1: memref<8x32xf32, #tpu.memory_space<vmem>>, %arg2: memref<8x32xf32, #tpu.memory_space<vmem>>, %arg3: memref<8x32xbf16, #tpu.memory_space<vmem>>, %arg4: memref<8x32xbf16, #tpu.memory_space<vmem>>, %arg5: memref<8x1xf32, #tpu.memory_space<vmem>>) attributes {dimension_semantics = [#tpu.dimension_semantics<parallel>], iteration_bounds = array<i64: 1>, scalar_prefetch = 0 : i64, scratch_operands = 0 : i64, tpu.core_type = #tpu.core_type<tc>, window_params = [{transform_indices = @transform_0, window_bounds = array<i64: 8, 32>}, {transform_indices = @transform_1, window_bounds = array<i64: 8, 32>}, {transform_indices = @transform_2, window_bounds = array<i64: 8, 32>}, {transform_indices = @transform_3, window_bounds = array<i64: 8, 32>}, {transform_indices = @transform_4, window_bounds = array<i64: 8, 1>}]} {
    %c0 = arith.constant 0 : index
    %c0_0 = arith.constant 0 : index
    %0 = vector.load %arg1[%c0, %c0_0] : memref<8x32xf32, #tpu.memory_space<vmem>>, vector<8x32xf32>
    %c0_1 = arith.constant 0 : index
    %c0_2 = arith.constant 0 : index
    %1 = vector.load %arg2[%c0_1, %c0_2] : memref<8x32xf32, #tpu.memory_space<vmem>>, vector<8x32xf32>
    %2 = arith.mulf %0, %0 : vector<8x32xf32>
    %cst = arith.constant dense<0.000000e+00> : vector<8xf32>
    %3 = vector.multi_reduction <add>, %2, %cst [1] : vector<8x32xf32> to vector<8xf32>
    %4 = vector.shape_cast %3 : vector<8xf32> to vector<8x1xf32>
    %cst_3 = arith.constant 1.000000e-24 : f32
    %5 = vector.broadcast %cst_3 : f32 to vector<8x1xf32>
    %6 = arith.maximumf %4, %5 : vector<8x1xf32>
    %7 = math.rsqrt %6 : vector<8x1xf32>
    %8 = arith.mulf %1, %1 : vector<8x32xf32>
    %cst_4 = arith.constant dense<0.000000e+00> : vector<8xf32>
    %9 = vector.multi_reduction <add>, %8, %cst_4 [1] : vector<8x32xf32> to vector<8xf32>
    %10 = vector.shape_cast %9 : vector<8xf32> to vector<8x1xf32>
    %cst_5 = arith.constant 1.000000e-24 : f32
    %11 = vector.broadcast %cst_5 : f32 to vector<8x1xf32>
    %12 = arith.maximumf %10, %11 : vector<8x1xf32>
    %13 = math.rsqrt %12 : vector<8x1xf32>
    %14 = vector.broadcast %7 : vector<8x1xf32> to vector<8x32xf32>
    %15 = arith.mulf %0, %14 : vector<8x32xf32>
    %16 = vector.broadcast %13 : vector<8x1xf32> to vector<8x32xf32>
    %17 = arith.mulf %1, %16 : vector<8x32xf32>
    %18 = arith.truncf %15 : vector<8x32xf32> to vector<8x32xbf16>
    %c0_6 = arith.constant 0 : index
    %c0_7 = arith.constant 0 : index
    %19 = vector.load %arg3[%c0_6, %c0_7] : memref<8x32xbf16, #tpu.memory_space<vmem>>, vector<8x32xbf16>
    tpu.vector_store %arg3[%c0_6, %c0_7], %18 {strides = array<i32>} : memref<8x32xbf16, #tpu.memory_space<vmem>>, vector<8x32xbf16>,
    %20 = arith.truncf %17 : vector<8x32xf32> to vector<8x32xbf16>
    %c0_8 = arith.constant 0 : index
    %c0_9 = arith.constant 0 : index
    %21 = vector.load %arg4[%c0_8, %c0_9] : memref<8x32xbf16, #tpu.memory_space<vmem>>, vector<8x32xbf16>
    tpu.vector_store %arg4[%c0_8, %c0_9], %20 {strides = array<i32>} : memref<8x32xbf16, #tpu.memory_space<vmem>>, vector<8x32xbf16>,
    %22 = arith.mulf %15, %17 : vector<8x32xf32>
    %cst_10 = arith.constant dense<0.000000e+00> : vector<8xf32>
    %23 = vector.multi_reduction <add>, %22, %cst_10 [1] : vector<8x32xf32> to vector<8xf32>
    %24 = vector.shape_cast %23 : vector<8xf32> to vector<8x1xf32>
    %c0_11 = arith.constant 0 : index
    %c0_12 = arith.constant 0 : index
    %25 = vector.load %arg5[%c0_11, %c0_12] : memref<8x1xf32, #tpu.memory_space<vmem>>, vector<8x1xf32>
    tpu.vector_store %arg5[%c0_11, %c0_12], %24 {strides = array<i32>} : memref<8x1xf32, #tpu.memory_space<vmem>>, vector<8x1xf32>,
    return
  }
  func.func @transform_0(%arg0: i32) -> (i32, i32) {
    %c0_i32 = arith.constant 0 : i32
    %c0_i32_0 = arith.constant 0 : i32
    return %arg0, %c0_i32 : i32, i32
  }
  func.func @transform_1(%arg0: i32) -> (i32, i32) {
    %c0_i32 = arith.constant 0 : i32
    %c0_i32_0 = arith.constant 0 : i32
    return %arg0, %c0_i32 : i32, i32
  }
  func.func @transform_2(%arg0: i32) -> (i32, i32) {
    %c0_i32 = arith.constant 0 : i32
    %c0_i32_0 = arith.constant 0 : i32
    return %arg0, %c0_i32 : i32, i32
  }
  func.func @transform_3(%arg0: i32) -> (i32, i32) {
    %c0_i32 = arith.constant 0 : i32
    %c0_i32_0 = arith.constant 0 : i32
    return %arg0, %c0_i32 : i32, i32
  }
  func.func @transform_4(%arg0: i32) -> (i32, i32) {
    %c0_i32 = arith.constant 0 : i32
    %c0_i32_0 = arith.constant 0 : i32
    return %arg0, %c0_i32 : i32, i32
  }
}

</mosaic_0001>

<bundles_post_ra>
// kernel: tpu_custom_call.1
= control target key start
LH: loop header
LB: loop body
LE: loop exit
PB: predicated region body
PF: predicated region fallthrough
CT: control target
= control target key end

     0   :  { %10 = vsyncpa [#allocation3], 0  ;;  %s289_s0 = inlined_call_operand.hbm [shape: f32[8,32], index: 0, kind: input, shape index: {}]   ;;  %s290_s1 = inlined_call_operand.hbm [shape: f32[8,32], index: 1, kind: input, shape index: {}]   ;;  %s291_s2 = inlined_call_operand.hbm [shape: bf16[8,32], index: 2, kind: output, shape index: {0}]   ;;  %s292_s3 = inlined_call_operand.hbm [shape: bf16[8,32], index: 3, kind: output, shape index: {1}]   ;;  %s293_s4 = inlined_call_operand.vmem [shape: f32[8,1], index: 4, kind: output, shape index: {2}]  }
   0x1   :  { %11 = vsyncpa [#allocation6], 0 }
   0x2   :  { %12 = vsyncpa [#allocation4], 0 }
   0x3   :  { %13 = vsyncpa [#allocation9], 0  ;;  %s206_s15 = smov [#allocation2]   ;;  %s207_s17 = smov [#allocation5]  }
   0x4   :  { %s20_s16 = sshll.u32 %s206_s15, 4  ;;  %s30_s18 = sshll.u32 %s207_s17, 4  ;;  %s21_s16 = int_to_ptr.vmem [resolvable:$true] %s20_s16  ;;  %s31_s18 = int_to_ptr.vmem [resolvable:$true] %s30_s18 }
   0x5   :  { %s110_s21 = scalar_lea.hbm %s289_s0, 128 }
   0x6   :  { %p111_p0 = scmp.ne.s32.totalorder %s289_s0, %s110_s21  ;;  %p114_p1 = scmp.lt.u32.totalorder %s110_s21, %s289_s0 }
   0x8   :  { %p116_p2 = pnand %p114_p1, %p111_p0 }
   0xa   :  { %119 = shalt.err (!%p116_p2)
}
   0xb   :  { %s120_s26 = scalar_lea.vmem %s21_s16, 128  ;;  %p125_p4 = scmp.lt.s32.totalorder %s21_s16, %s21_s16 }
   0xc   :  { %p121_p3 = scmp.ne.s32.totalorder %s21_s16, %s120_s26  ;;  %p126_p5 = scmp.lt.s32.totalorder %s120_s26, %s120_s26 }
   0xe   :  { %p127_p6 = por %p126_p5, %p125_p4 }
  0x10   :  { %p128_p7 = pnand %p127_p6, %p121_p3 }
  0x12   :  { %131 = shalt.err (!%p128_p7)
}
  0x13   :  { %23 = dma.hbm_to_vmem [thread:$0]  %s289_s0, 128, %s21_s16, [#allocation3]  }
  0x14   :  { %s132_s5 = scalar_lea.hbm %s290_s1, 128 }
  0x15   :  { %p133_p8 = scmp.ne.s32.totalorder %s290_s1, %s132_s5  ;;  %p136_p9 = scmp.lt.u32.totalorder %s132_s5, %s290_s1 }
  0x17   :  { %p138_p10 = pnand %p136_p9, %p133_p8 }
  0x19   :  { %141 = shalt.err (!%p138_p10)
}
  0x1a   :  { %s142_s10 = scalar_lea.vmem %s31_s18, 128  ;;  %p147_p12 = scmp.lt.s32.totalorder %s31_s18, %s31_s18 }
  0x1b   :  { %p143_p11 = scmp.ne.s32.totalorder %s31_s18, %s142_s10  ;;  %p148_p13 = scmp.lt.s32.totalorder %s142_s10, %s142_s10 }
  0x1d   :  { %p149_p0 = por %p148_p13, %p147_p12 }
  0x1f   :  { %p150_p1 = pnand %p149_p0, %p143_p11 }
  0x21   :  { %153 = shalt.err (!%p150_p1)
}
  0x22   :  { %33 = dma.hbm_to_vmem [thread:$0]  %s290_s1, 128, %s31_s18, [#allocation6]  }
  0x23   :  { %198 = dma.done.wait [#allocation3], 128  }
  0x24   :  { %199 = vsyncadd [#allocation3], 4294967168 }
  0x25   :  { %200 = dma.done.wait [#allocation6], 128  }
  0x26   :  { %201 = vsyncadd [#allocation6], 4294967168  ;;  %v40_v0 = vld [vmem:[#allocation2] sm:$0xff]  ;;  %vm43_vm0 = vcmask 261120   ;;  %v41_v1 = vld [vmem:[#allocation5] sm:$0xff]  ;;  %vm58_vm1 = vcmask 257024  }
  0x27   :  { %v42_v2 = vmul.f32 %v40_v0, %v40_v0  ;;  %v49_v3 = vmul.f32 %v41_v1, %v41_v1  ;;  %s208_s1 = smov [#allocation7]   ;;  %s209_s13 = smov [#allocation8]  }
  0x28   :  { %s74_s12 = sshll.u32 %s208_s1, 4  ;;  %s84_s14 = sshll.u32 %s209_s13, 4  ;;  %s75_s12 = int_to_ptr.vmem [resolvable:$true] %s74_s12  ;;  %s85_s14 = int_to_ptr.vmem [resolvable:$true] %s84_s14 }
  0x29   :  { %v44_v4 = vsel %vm43_vm0, %v42_v2, 0.0  ;;  %v50_v5 = vsel %vm43_vm0, %v49_v3, 0.0  ;;  %s154_s15 = scalar_lea.vmem %s75_s12, 64  ;;  %p159_p3 = scmp.lt.s32.totalorder %s75_s12, %s75_s12 }
  0x2a   :  { %45 = vadd.xlane.f32.xlu0 %v44_v4  ;;  %p155_p2 = scmp.ne.s32.totalorder %s75_s12, %s154_s15  ;;  %p160_p4 = scmp.lt.s32.totalorder %s154_s15, %s154_s15 }
  0x2c   :  { %p161_p5 = por %p160_p4, %p159_p3 }
  0x2e   :  { %51 = vadd.xlane.f32.xlu0 %v50_v5  ;;  %p162_p6 = pnand %p161_p5, %p155_p2 }
  0xb7   :  { %v46_v6 = vpop.xlane.xlu0 %45 }
  0xb8   :  { %v47_v7 = vmax.f32 %v46_v6, 1e-24 }
  0xba   :  { %106 = vrsqrt.f32 %v47_v7 }
  0xbb   :  { %v52_v8 = vpop.xlane.xlu0 %51 }
  0xbc   :  { %v53_v9 = vmax.f32 %v52_v8, 1e-24 }
  0xbe   :  { %108 = vrsqrt.f32 %v53_v9 }
  0xc4   :  { %v107_v10 = vpop.eup %106 }
  0xc5   :  { %v55_v11 = vmul.f32 %v107_v10, %v40_v0 }
  0xc7   :  { %v57_v12 = vpack.c.bf16 %v55_v11, %v55_v11 }
  0xc8   :  { %v109_v13 = vpop.eup %108 }
  0xc9   :  { %v56_v14 = vmul.f32 %v109_v13, %v41_v1  ;;  %59 = vst.msk [vmem:[#allocation7] sm:$0xf] %vm58_vm1, %v57_v12 }
  0xcb   :  { %v62_v15 = vmul.f32 %v56_v14, %v55_v11  ;;  %v60_v16 = vpack.c.bf16 %v56_v14, %v56_v14 }
  0xcd   :  { %v63_v17 = vsel %vm43_vm0, %v62_v15, 0.0  ;;  %61 = vst.msk [vmem:[#allocation8] sm:$0xf] %vm58_vm1, %v60_v16 }
  0xce   :  { %64 = vadd.xlane.f32.xlu1 %v63_v17 }
  0xcf   :  { %165 = shalt.err (!%p162_p6)
}
  0xd0   :  { %s166_s18 = scalar_lea.hbm %s291_s2, 64 }
  0xd1   :  { %p167_p7 = scmp.ne.s32.totalorder %s291_s2, %s166_s18  ;;  %p170_p8 = scmp.lt.u32.totalorder %s166_s18, %s291_s2 }
  0xd3   :  { %p172_p9 = pnand %p170_p8, %p167_p7 }
  0xd5   :  { %175 = shalt.err (!%p172_p9)
}
  0xd6   :  { %77 = dma.vmem_to_hbm [thread:$0]  %s75_s12, 64, %s291_s2, [#allocation4]  }
  0xd7   :  { %s176_s25 = scalar_lea.vmem %s85_s14, 64  ;;  %p181_p11 = scmp.lt.s32.totalorder %s85_s14, %s85_s14 }
  0xd8   :  { %p177_p10 = scmp.ne.s32.totalorder %s85_s14, %s176_s25  ;;  %p182_p12 = scmp.lt.s32.totalorder %s176_s25, %s176_s25 }
  0xda   :  { %p183_p13 = por %p182_p12, %p181_p11 }
  0xdc   :  { %p184_p0 = pnand %p183_p13, %p177_p10 }
  0xde   :  { %187 = shalt.err (!%p184_p0)
}
  0xdf   :  { %s188_s28 = scalar_lea.hbm %s292_s3, 64 }
  0xe0   :  { %p189_p1 = scmp.ne.s32.totalorder %s292_s3, %s188_s28  ;;  %p192_p2 = scmp.lt.u32.totalorder %s188_s28, %s292_s3 }
  0xe2   :  { %p194_p3 = pnand %p192_p2, %p189_p1 }
  0xe4   :  { %197 = shalt.err (!%p194_p3)
}
  0xe5   :  { %87 = dma.vmem_to_hbm [thread:$0]  %s85_s14, 64, %s292_s3, [#allocation9]   ;;  %vm66_vm2 = vcmask 7168  }
 0x15b   :  { %v65_v18 = vpop.xlane.xlu1 %64 }
 0x15c   :  { %67 = vst.msk [vmem:[%s293_s4] sm:$0xff] %vm66_vm2, %v65_v18 }
 0x15d   :  { %202 = dma.done.wait [#allocation4], 64  }
 0x15e   :  { %203 = vsyncadd [#allocation4], 4294967232 }
 0x15f   :  { %204 = dma.done.wait [#allocation9], 64  }
 0x160   :  { %205 = vsyncadd [#allocation9], 4294967232 }
 0x161   :  { %98 = vsyncpa [#allocation3], 1 }
 0x162   :  { %99 = vsyncpa [#allocation6], 1 }
 0x163   :  { %100 = vsyncpa [#allocation4], 1 }
 0x164   :  { %101 = vsyncpa [#allocation9], 1 }

</bundles_post_ra>
